<compile_context>
chip_gen: v5e
topology: v5e:2x2
jax: 0.10.0
libtpu: 0.0.40
codegen_flags: <defaults>
</compile_context>

<pallas_src>
import math

import jax
import jax.numpy as jnp
from jax.experimental import pallas as pl
from jax.experimental.pallas import tpu as pltpu


def _round_up(x, m):
    return ((x + m - 1) // m) * m


def _gather_block_kernel(ids_ref, emb_ref, out_ref, sem):
    """Gather T embedding rows into one (T, H) output block.

    ids_ref : SMEM (N_pad,) int32   -- scalar-prefetched flat token ids
    emb_ref : (V, H) embedding table.  Either a raw HBM ref
              (BlockSpec(memory_space=pl.ANY), large-table path) or a
              VMEM-resident block (constant-index BlockSpec, small-table
              fast path).  The row-gather code is identical for both.
    out_ref : VMEM (T, H) output block -- rows are DMA'd straight into it
              (no landing buffer / no extra VMEM->VMEM copy pass).
    sem     : single DMA semaphore shared by every row copy of this block.
    """
    T = out_ref.shape[0]
    base = pl.program_id(0) * T

    # Issue all T row copies back-to-back: maximum outstanding DMAs (the HW
    # queue backpressures if it fills), and no scalar id read ever sits
    # behind a semaphore wait.  Padded tail slots (the host pads ids with 0,
    # a valid row) just re-fetch row 0 and are sliced off by the wrapper.
    @pl.loop(0, T)
    def _(t):
        row = ids_ref[base + t]
        pltpu.make_async_copy(
            emb_ref.at[pl.ds(row, 1), :],
            out_ref.at[pl.ds(t, 1), :],
            sem,
        ).start()

    # One aggregate wait: DMA completion semaphores count bytes, so a single
    # (T, H)-sized descriptor retires all T (1, H) row copies issued above.
    # Every copy lands before the body returns, so the pipelined output
    # writeback sees the finished block.
    pltpu.make_async_copy(out_ref, out_ref, sem).wait()


def token_embedding(
    input_ids,
    emb_table,
    *,
    block_tokens=512,
    resident_table_bytes=4 * 1024 * 1024,
    out_block_budget_bytes=16 * 1024 * 1024,
    force_path=None,
):
    """nn.Embedding forward: int ids [...] -> [..., H] with emb_table [V, H]."""
    if force_path not in (None, "resident", "hbm"):
        raise ValueError(f"force_path must be None|'resident'|'hbm', got {force_path}")

    orig_shape = tuple(input_ids.shape)
    V, H = emb_table.shape
    itemsize = emb_table.dtype.itemsize
    N = math.prod(orig_shape)

    table_bytes = V * H * itemsize
    if force_path is None:
        # Small-table fast path: keep the whole table resident in VMEM so the
        # per-row gathers stay on-chip and the table is read from HBM once.
        # Threshold leaves headroom for v7x (64 MiB physical VMEM).
        use_resident = table_bytes <= resident_table_bytes
    else:
        use_resident = force_path == "resident"

    # Token-block size: multiple of 8 (sublane rule), large by default so the
    # ~0.35 us per-grid-step overhead is amortized, and capped so the
    # double-buffered (T, H) output block stays inside the VMEM budget.
    T = min(_round_up(block_tokens, 8), _round_up(N, 8))
    max_t = max(8, (out_block_budget_bytes // (2 * H * itemsize)) // 8 * 8)
    T = min(T, max_t)
    num_blocks = pl.cdiv(N, T)
    N_pad = num_blocks * T

    # Token ids: scalar-prefetched whole into SMEM (1-D SMEM pads to
    # next_pow2(4*N) bytes), which is fine for typical B*S.
    # TODO(synk): tile ids into per-block SMEM inputs for very large token
    # counts (>~64K tokens) to keep the SMEM footprint bounded.
    ids_flat = input_ids.reshape(N).astype(jnp.int32)
    if N_pad != N:
        # Pad with id 0 (a valid row); padded rows are sliced off below.
        ids_flat = jnp.concatenate(
            [ids_flat, jnp.zeros((N_pad - N,), jnp.int32)])

    if use_resident:
        # Constant block index -> the table is DMA'd into VMEM once and stays
        # resident across the whole grid; row gathers become VMEM->VMEM.
        emb_spec = pl.BlockSpec((V, H), lambda i, ids: (0, 0))
        table_vmem = 2 * table_bytes          # worst case: double-buffered
    else:
        # Table stays in HBM; rows are gathered with manual DMAs.
        emb_spec = pl.BlockSpec(memory_space=pl.ANY)
        table_vmem = 0

    # Explicit VMEM budget: double-buffered (T, H) output + resident table.
    vmem_needed = 2 * T * H * itemsize + table_vmem
    vmem_limit = int(min(max(vmem_needed + (4 << 20), 32 << 20), 48 << 20))

    out_flat = pl.pallas_call(
        _gather_block_kernel,
        out_shape=jax.ShapeDtypeStruct((N_pad, H), emb_table.dtype),
        grid_spec=pltpu.PrefetchScalarGridSpec(
            num_scalar_prefetch=1,                      # ids_flat -> SMEM
            grid=(num_blocks,),
            in_specs=[emb_spec],
            out_specs=pl.BlockSpec((T, H), lambda i, ids: (i, 0)),
            scratch_shapes=[pltpu.SemaphoreType.DMA(())],
        ),
        compiler_params=pltpu.CompilerParams(
            # Independent token blocks -> megacore-shardable on multi-TC
            # parts; neutral on single-TC chips.
            dimension_semantics=("parallel",),
            vmem_limit_bytes=vmem_limit,
        ),
    )(ids_flat, emb_table)

    return out_flat[:N].reshape(*orig_shape, H)


def _reference(input_ids, emb_table):
    return emb_table[input_ids]


if __name__ == "__main__":
    # Small config consistent with the module's __init__ / forward.
    vocab_size = 50
    hidden_size = 32
    B, S = 2, 8

    key = jax.random.PRNGKey(0)
    k_ids, k_w = jax.random.split(key)

    input_ids = jax.random.randint(k_ids, (B, S), 0, vocab_size, dtype=jnp.int32)
    # Deterministic parameter init (normal, std=0.02) mirroring the module.
    emb_table = 0.02 * jax.random.normal(
        k_w, (vocab_size, hidden_size), jnp.float32)

    ref = _reference(input_ids, emb_table)

    # Default dispatch -> VMEM-resident fast path (table is tiny).
    # block_tokens=8 keeps a multi-block grid even at this small size.
    out = jax.block_until_ready(
        token_embedding(input_ids, emb_table, block_tokens=8))
    assert out.shape == (B, S, hidden_size)
    assert bool(jnp.array_equal(out, ref)), "resident-path mismatch"

    # Also exercise the HBM row-gather path (used when the table does not
    # fit in VMEM) on the same inputs.
    out_hbm = jax.block_until_ready(
        token_embedding(input_ids, emb_table, block_tokens=8, force_path="hbm"))
    assert bool(jnp.array_equal(out_hbm, ref)), "hbm-path mismatch"

    print("KERNEL_OK")
</pallas_src>

<mosaic_0001>
module attributes {stable_mosaic.version = 11 : i64} {
  func.func @_gather_block_kernel(%arg0: i32, %arg1: memref<16xi32, #tpu.memory_space<smem>>, %arg2: memref<50x32xf32, #tpu.memory_space<vmem>>, %arg3: memref<8x32xf32, #tpu.memory_space<vmem>>, %arg4: memref<!tpu.dma_semaphore, #tpu.memory_space<semaphore_mem>>) attributes {dimension_semantics = [#tpu.dimension_semantics<parallel>], iteration_bounds = array<i64: 2>, scalar_prefetch = 1 : i64, scratch_operands = 1 : i64, tpu.core_type = #tpu.core_type<tc>, window_params = [{pipeline_mode = #tpu.pipeline_mode<synchronous>, transform_indices = @transform_0, window_bounds = array<i64: 50, 32>}, {transform_indices = @transform_1, window_bounds = array<i64: 8, 32>}]} {
    %c8_i32 = arith.constant 8 : i32
    %0 = arith.muli %arg0, %c8_i32 : i32
    %c0_i32 = arith.constant 0 : i32
    %c8_i32_0 = arith.constant 8 : i32
    %1 = arith.addi %c0_i32, %c8_i32_0 : i32
    %c1_i32 = arith.constant 1 : i32
    scf.for %arg5 = %c0_i32 to %1 step %c1_i32  : i32 {
      %c1_i32_2 = arith.constant 1 : i32
      %2 = arith.muli %arg5, %c1_i32_2 : i32
      %c0_i32_3 = arith.constant 0 : i32
      %3 = arith.addi %c0_i32_3, %2 : i32
      %4 = arith.addi %0, %3 : i32
      %5 = arith.index_cast %4 : i32 to index
      %6 = memref.load %arg1[%5] : memref<16xi32, #tpu.memory_space<smem>>
      %c0_i32_4 = arith.constant 0 : i32
      %7 = tpu.memref_slice %arg2[%6, %c0_i32_4] : memref<50x32xf32, #tpu.memory_space<vmem>> -> memref<1x32xf32, #tpu.memory_space<vmem>>
      %c0_i32_5 = arith.constant 0 : i32
      %8 = tpu.memref_slice %arg3[%3, %c0_i32_5] : memref<8x32xf32, #tpu.memory_space<vmem>> -> memref<1x32xf32, #tpu.memory_space<vmem>>
      tpu.enqueue_dma source(%7 : memref<1x32xf32, #tpu.memory_space<vmem>>) target(%8 : memref<1x32xf32, #tpu.memory_space<vmem>>) target_semaphore(%arg4 : memref<!tpu.dma_semaphore, #tpu.memory_space<semaphore_mem>>)
    }
    %c8_i32_1 = arith.constant 8 : i32
    tpu.wait_dma2 semaphore(%arg4 : memref<!tpu.dma_semaphore, #tpu.memory_space<semaphore_mem>>) src(%arg3 : memref<8x32xf32, #tpu.memory_space<vmem>>) dst(%arg3 : memref<8x32xf32, #tpu.memory_space<vmem>>)
    return
  }
  func.func @transform_0(%arg0: i32, %arg1: memref<16xi32, #tpu.memory_space<smem>>) -> (i32, i32) {
    %c0_i32 = arith.constant 0 : i32
    %c0_i32_0 = arith.constant 0 : i32
    %c0_i32_1 = arith.constant 0 : i32
    return %c0_i32, %c0_i32_0 : i32, i32
  }
  func.func @transform_1(%arg0: i32, %arg1: memref<16xi32, #tpu.memory_space<smem>>) -> (i32, i32) {
    %c0_i32 = arith.constant 0 : i32
    %c0_i32_0 = arith.constant 0 : i32
    return %arg0, %c0_i32 : i32, i32
  }
}

</mosaic_0001>

<bundles_post_ra>
// kernel: tpu_custom_call.1
= control target key start
LH: loop header
LB: loop body
LE: loop exit
PB: predicated region body
PF: predicated region fallthrough
CT: control target
= control target key end

     0   :  { %s378_s12 = smov [#allocation4]   ;;  %s476_s0 = inlined_call_operand.vmem [shape: s32[16], index: 0, kind: input, shape index: {}]   ;;  %s477_s1 = inlined_call_operand.vmem [shape: f32[50,32], index: 1, kind: input, shape index: {}]   ;;  %s478_s2 = inlined_call_operand.hbm [shape: f32[16,32], index: 2, kind: output, shape index: {}]  }
   0x1   :  { %s8_s11 = sshll.u32 %s476_s0, 4  ;;  %s9_s11 = int_to_ptr.vmem [resolvable:$true] %s8_s11 }
   0x2   :  { %11 = dma.vmem_to_smem %s9_s11, 16, %s378_s12, [#allocation3] }
   0x3   :  { %350 = dma.done.wait [#allocation3], 16 }
   0x4   :  { %351 = vsyncadd [#allocation3], 4294967280 }
   0x5   :  { %14 = sfence }
   0x6   :  { %15 = vsyncpa [#allocation6], 0 }
   0x7   :  { %17 = vsyncpa [#allocation6 + $0x1], 0  ;;  %s397_s13 = smov 0   ;;  %s399_s14 = smov 0  }
   0x8   :  { %s401_s15 = smov 0   ;;  %s403_s16 = smov 0  }
   0x9 LB: > { %s231_s0 = sadd.s32 4294967295, %s372_s16   ;;  %s232_s17 = sadd.s32 4294967294, %s372_s16   ;;  %s372_s16 = sphi %s403_s16, %s484_s16   ;;  %s368_s15 = sphi %s401_s15, %s483_s15   ;;  %s364_s14 = sphi %s399_s14, %s482_s14   ;;  %s360_s13 = sphi %s397_s13, %s481_s13  }
   0xa   : > { %s420_s18 = sadd.s32 1, %s372_s16   ;;  %s51_s19 = sadd.s32 1, %s368_s15 }
   0xb   : > { %s48_s20 = ssub.s32 %s372_s16, %s420_s18  ;;  %p61_p0 = scmp.ne.s32.totalorder %s368_s15, %s364_s14 }
   0xc   : > { %p49_p1 = scmp.eq.s32.totalorder %s48_s20, 0  ;;  %p62_p2 = scmp.eq.s32.totalorder %s231_s0, 1 }
   0xd   : > { %p67_p3 = scmp.ne.s32.totalorder %s364_s14, %s360_s13  ;;  %p68_p4 = scmp.eq.s32.totalorder %s232_s17, 1 }
   0xe   : > { %s430_s21 = scalar_select %p49_p1, %s368_s15, %s51_s19  }
   0xf   : > { %p432_p5 = por %p62_p2, %p61_p0  ;;  %p436_p6 = por %p68_p4, %p67_p3 }
  0x10   : > { %p234_p7 = scmp.ge.s32.totalorder %s372_s16, 1  ;;  %p89_p8 = scmp.lt.s32.totalorder %s372_s16, 3 }
  0x12   : > { %p90_p9 = pnand %p234_p7, %p89_p8 }
  0x13   : > { %s101_s24 = sand.u32 (!%p90_p9), 1, %s364_s14   ;;  %s236_s25 = sshll.u32 (!%p90_p9), %s231_s0, 3 }
  0x14   : > { %93 = sbr.rel (%p90_p9) target bundleno = 58 (0x3a), region = 24  ;;  %s235_s26 = sshll.u32 (!%p90_p9), %s101_s24, 3 }
  0x15   : > { %s103_s27 = scalar_lea.vmem (!%p90_p9), [#allocation5], %s235_s26  ;;  %s374_s28 = smov (!%p90_p9), 0  }
  0x19 LB: >> { %s111_s29 = sadd.s32 %s376_s28, %s236_s25  ;;  %s114_s3 = scalar_lea.vmem %s103_s27, %s376_s28 [#allocation5]  ;;  %s376_s28 = sphi %s374_s28, %s110_s28  }
  0x1a   : >> { %s112_s30 = sld [smem:[#allocation4 + %s111_s29]] }
  0x20   : >> { %s113_s6 = scalar_lea.vmem %s477_s1, %s112_s30 }
  0x21   : >> { %v129_v0 = vld [vmem:[%s113_s6] sm:$0x1] }
  0x22   : >> { %130 = vst [vmem:[%s114_s3] sm:$0x1] %v129_v0 }
  0x23   : >> { %148 = vsyncadd [#allocation2], 16  ;;  %s110_s28 = sadd.s32 1, %s376_s28  }
  0x24   : >> { %p107_p10 = scmp.ge.s32.totalorder %s110_s28, 8  }
  0x26   : > { %109 = sbr.rel (!%p107_p10) target bundleno = 25 (0x19), region = 99 }
  0x2b   : > { %352 = dma.done.wait [#allocation2], 128 }
  0x2c   : > { %353 = vsyncadd [#allocation2], 4294967168  ;;  %s163_s9 = scalar_lea.hbm %s478_s2, %s236_s25  ;;  %s165_s10 = sshll.u32 %s103_s27, 4  ;;  %s166_s10 = int_to_ptr.vmem [resolvable:$true] %s165_s10 }
  0x2d   : > { %s167_s11 = sshll.u32 %s163_s9, 4  ;;  %s153_s12 = scalar_lea.sflag [#allocation6], %s101_s24  ;;  %s168_s11 = int_to_ptr.hbm [resolvable:$true] %s167_s11 }
  0x2e   : > { %s316_s0 = sshra.s32 %s168_s11, 4  ;;  %s322_s26 = scalar_lea.hbm %s478_s2, 16  ;;  %s317_s0 = int_to_ptr.hbm [resolvable:$true] %s316_s0 }
  0x2f   : > { %s318_s17 = scalar_lea.hbm %s317_s0, 8  ;;  %p323_p0 = scmp.lt.s32.totalorder %s317_s0, %s478_s2 }
  0x30   : > { %p319_p11 = scmp.ne.s32.totalorder %s317_s0, %s318_s17  ;;  %p324_p1 = scmp.lt.s32.totalorder %s322_s26, %s318_s17 }
  0x32   : > { %p320_p12 = pnand %p319_p11, %p432_p5  ;;  %p325_p2 = por %p324_p1, %p323_p0 }
  0x34   : > { %p321_p13 = pneg %p320_p12 }
  0x36   : > { %p326_p3 = pnand %p325_p2, %p321_p13 }
  0x38   : > { %329 = shalt.err (!%p326_p3)
}
  0x39   : > { %242 = dma.vmem_to_hbm [thread:$0]  (%p432_p5), %s166_s10, 128, %s168_s11, %s153_s12  }
  0x3a PF: > { %p248_p4 = scmp.ge.s32.totalorder %s372_s16, 2  ;;  %s179_s24 = sand.u32 1, %s360_s13  }
  0x3b   : > { %s180_s25 = scalar_lea.sflag [#allocation6], %s179_s24 }
  0x3c   : > { %p245_p7 = pnand %p248_p4, %p436_p6 }
  0x3e   : > { %p246_p8 = pneg %p245_p7 }
  0x40   : > { %355 = dma.done.wait (%p246_p8), %s180_s25, 128  }
  0x41   : > { %357 = vsyncadd (%p246_p8), %s180_s25, 4294967168  ;;  %p20_p9 = scmp.ge.s32.totalorder %s420_s18, 4   ;;  %s481_s13 = smov %s364_s14 }
  0x42   : > { %s482_s14 = smov %s368_s15  ;;  %s483_s15 = smov %s430_s21 }
  0x43   : > { %s484_s16 = smov %s420_s18  ;;  %22 = sbr.rel (!%p20_p9) target bundleno = 9 (0x9), region = 110 }
  0x48   :  { %186 = vsyncpa [#allocation6], 1 }
  0x49   :  { %188 = vsyncpa [#allocation6 + $0x1], 1 }
  0x4a   :  { %189 = vsyncmov [#allocation2] }
  0x4d   :  { %s190_s16 = vpop.sfrf %189 }
  0x4e   :  { %p241_p5 = scmp.ne.s32.totalorder %s190_s16, 0 }
  0x50   :  { %194 = shalt.err (%p241_p5)  }

</bundles_post_ra>
